<compile_context>
chip_gen: v5e
topology: v5e:2x2
jax: 0.10.0
libtpu: 0.0.40
codegen_flags: <defaults>
</compile_context>

<pallas_src>
import functools

import jax
import jax.numpy as jnp
from jax import lax
from jax.experimental import pallas as pl
from jax.experimental.pallas import tpu as pltpu


def chain_crf_kernel(em_ref, tags_ref, mask_ref, ut_ref, out_ref):
    """One batch tile.

    em_ref:   [S, C, Bt]  emission scores (cast to f32 in-kernel)
    tags_ref: [S, Bt]     int32 gold tags
    mask_ref: [S, Bt]     f32 sequence mask
    ut_ref:   [C, C]      f32 transposed transition matrix, Ut[n, p] = U[p, n]
    out_ref:  [1, Bt]     f32 per-example (free_energy - path_energy)
    """
    S, C, Bt = em_ref.shape

    # Loop-invariant transition tensors (computed once, reused every step).
    Ut = ut_ref[...]                                   # [C, C]
    maxU = jnp.max(Ut, keepdims=True)                  # [1, 1]
    eUt = jnp.exp(Ut - maxU)                           # [C, C], entries in (0, 1]

    iota_c = lax.broadcasted_iota(jnp.int32, (C, Bt), 0)   # class id on sublanes

    def read_step(j):
        em_j = em_ref[j].astype(jnp.float32)           # [C, Bt]
        tags_j = tags_ref[pl.ds(j, 1), :]              # [1, Bt] int32
        mask_j = mask_ref[pl.ds(j, 1), :]              # [1, Bt] f32
        oh_j = (iota_c == tags_j).astype(jnp.float32)  # [C, Bt] one-hot(tags[j])
        return em_j, mask_j, oh_j

    # ------------------------- t = 0 : init ---------------------------------
    em0, mask0, oh0 = read_step(0)
    alpha0 = em0                                                       # [C, Bt]
    path0 = jnp.sum(oh0 * em0, axis=0, keepdims=True) * mask0          # [1, Bt]

    # ------------- t = 1 .. S-1 : fused path energy + forward ---------------
    def body(j, carry):
        alpha, path_acc, prev_oh = carry
        em_j, mask_j, oh_j = read_step(j)

        # ---- gold path energy increments (no gather; one tiny MXU matmul) ----
        e_gold = jnp.sum(oh_j * em_j, axis=0, keepdims=True)           # [1, Bt]
        # u_rows[n, b] = U[tags[j-1, b], n]
        u_rows = jnp.dot(Ut, prev_oh, preferred_element_type=jnp.float32)  # [C, Bt]
        t_gold = jnp.sum(u_rows * oh_j, axis=0, keepdims=True)         # [1, Bt]
        path_acc = path_acc + (e_gold + t_gold) * mask_j

        # ---- forward recursion: exp-space logsumexp on the MXU ----
        mx = jnp.max(alpha, axis=0, keepdims=True)                     # [1, Bt]
        s = jnp.exp(alpha - mx)                                        # [C, Bt]
        contrib = jnp.dot(eUt, s, preferred_element_type=jnp.float32)  # [C, Bt]
        alpha_on = em_j + maxU + mx + jnp.log(contrib)                 # [C, Bt]
        # Masked step (PyTorch semantics): transition energy zeroed, so every
        # next-class gets logsumexp over previous alpha.
        alpha_off = mx + jnp.log(jnp.sum(s, axis=0, keepdims=True))    # [1, Bt]
        alpha = jnp.where(mask_j > 0.0, alpha_on, alpha_off)           # [C, Bt]
        return alpha, path_acc, oh_j

    # Short fixed trip counts benefit from unrolling (LLO can overlap EUP/MXU
    # work across steps); long sequences keep a rolled loop to bound code size.
    n_steps = S - 1
    unroll = n_steps if 0 < n_steps <= 8 else (4 if n_steps > 0 else 1)
    alpha, path_acc, _ = lax.fori_loop(1, S, body, (alpha0, path0, oh0),
                                       unroll=unroll)

    # Final free energy = logsumexp over classes.
    mxf = jnp.max(alpha, axis=0, keepdims=True)                        # [1, Bt]
    free_energy = mxf + jnp.log(jnp.sum(jnp.exp(alpha - mxf), axis=0, keepdims=True))

    out_ref[...] = free_energy - path_acc


@functools.partial(jax.jit, static_argnames=("b_tile",))
def chain_crf_loss(U, emissions, true_tags, mask=None, *, b_tile=128):
    """emissions: [B,S,C], true_tags: [B,S] int, mask: [B,S] -> scalar loss."""
    B, S, C = emissions.shape
    if mask is None:
        mask = jnp.ones((B, S), dtype=jnp.float32)

    # Seq-major, batch-on-lanes layout for the kernel.
    em_t = jnp.transpose(emissions, (1, 2, 0))                    # [S, C, B]
    tags_t = jnp.transpose(true_tags.astype(jnp.int32), (1, 0))   # [S, B]
    mask_t = jnp.transpose(mask.astype(jnp.float32), (1, 0))      # [S, B]
    u_t = jnp.transpose(U.astype(jnp.float32), (1, 0))            # [C, C] = U^T

    bt = min(b_tile, B)
    n_tiles = pl.cdiv(B, bt)
    b_pad = n_tiles * bt
    if b_pad != B:
        pad = b_pad - B
        em_t = jnp.pad(em_t, ((0, 0), (0, 0), (0, pad)))
        tags_t = jnp.pad(tags_t, ((0, 0), (0, pad)))
        mask_t = jnp.pad(mask_t, ((0, 0), (0, pad)))

    # Double-buffered input blocks + output + headroom; stay below v7x's 64 MiB.
    block_bytes = 4 * (S * C * bt + 2 * S * bt + C * C + bt)
    vmem_limit = int(min(max(3 * block_bytes + (2 << 20), 32 * 1024 * 1024),
                         56 * 1024 * 1024))

    out = pl.pallas_call(
        chain_crf_kernel,
        out_shape=jax.ShapeDtypeStruct((1, b_pad), jnp.float32),
        grid=(n_tiles,),
        in_specs=[
            pl.BlockSpec((S, C, bt), lambda i: (0, 0, i)),
            pl.BlockSpec((S, bt), lambda i: (0, i)),
            pl.BlockSpec((S, bt), lambda i: (0, i)),
            pl.BlockSpec((C, C), lambda i: (0, 0)),
        ],
        out_specs=pl.BlockSpec((1, bt), lambda i: (0, i)),
        compiler_params=pltpu.CompilerParams(
            dimension_semantics=("parallel",),
            vmem_limit_bytes=vmem_limit,
        ),
    )(em_t, tags_t, mask_t, u_t)

    return jnp.mean(out[0, :B])


def chain_crf_loss_ref(U, emissions, true_tags, mask):
    """Pure-JAX mirror of the PyTorch forward() for verification."""
    B, S, C = emissions.shape
    maskf = mask.astype(jnp.float32)
    emissions = emissions.astype(jnp.float32)
    oh = jax.nn.one_hot((true_tags * maskf).astype(jnp.int32), C, dtype=jnp.float32)
    energy1 = jnp.sum(oh * emissions, axis=2) * maskf
    energy2 = jnp.sum(energy1, axis=1)
    prev, nxt = true_tags[:, :-1], true_tags[:, 1:]
    trans = prev * C + nxt
    u_y = U.reshape(-1)[trans] * maskf[:, 1:]
    path_energy = energy2 + jnp.sum(u_y, axis=1)

    alpha = emissions[:, 0, :]
    for j in range(1, S):
        te = (emissions[:, j, None, :] + U[None]) * maskf[:, j, None, None]
        scores = alpha[:, :, None] + te
        alpha = jax.scipy.special.logsumexp(scores, axis=1)
    free_energy = jax.scipy.special.logsumexp(alpha, axis=1)
    return jnp.mean(free_energy - path_energy)


if __name__ == "__main__":
    key = jax.random.PRNGKey(0)

    def run_case(B, S, C, b_tile, full_mask=False):
        k_u, k_e, k_t, k_l = jax.random.split(jax.random.fold_in(key, B * 1000 + S), 4)
        # Parameters mirroring __init__: U ~ rand(C, C); b_start/b_end are zeros
        # and unused by forward(), so omitted from the compute.
        U = jax.random.uniform(k_u, (C, C), dtype=jnp.float32)
        emissions = jax.random.normal(k_e, (B, S, C), dtype=jnp.float32)
        true_tags = jax.random.randint(k_t, (B, S), 0, C, dtype=jnp.int32)
        if full_mask:
            mask = jnp.ones((B, S), dtype=jnp.float32)
        else:
            lengths = jax.random.randint(k_l, (B,), 1, S + 1, dtype=jnp.int32)
            mask = (jnp.arange(S)[None, :] < lengths[:, None]).astype(jnp.float32)

        loss = jax.block_until_ready(
            chain_crf_loss(U, emissions, true_tags, mask, b_tile=b_tile))
        ref = chain_crf_loss_ref(U, emissions, true_tags, mask)
        assert jnp.allclose(loss, ref, atol=1e-4, rtol=1e-4), (B, S, C, loss, ref)

    # Small shape matching the module's toy usage (single batch tile).
    run_case(B=2, S=8, C=5, b_tile=128)
    # Multi-tile grid path (2 batch tiles + lane padding of the batch axis).
    run_case(B=200, S=12, C=7, b_tile=128)
    # Longer sequence (rolled fori_loop path) with a dense mask.
    run_case(B=16, S=33, C=12, b_tile=128, full_mask=True)

    # TODO(synk): viterbi1 / viterbi2 / viterbi_decode are inference-only helpers
    # not used by forward(); they are not ported here.
    print("KERNEL_OK")
</pallas_src>

<mosaic_0001>
module attributes {stable_mosaic.version = 11 : i64} {
  func.func @chain_crf_kernel(%arg0: i32, %arg1: memref<8x5x2xf32, #tpu.memory_space<vmem>>, %arg2: memref<8x2xi32, #tpu.memory_space<vmem>>, %arg3: memref<8x2xf32, #tpu.memory_space<vmem>>, %arg4: memref<5x5xf32, #tpu.memory_space<vmem>>, %arg5: memref<1x2xf32, #tpu.memory_space<vmem>>) attributes {dimension_semantics = [#tpu.dimension_semantics<parallel>], iteration_bounds = array<i64: 1>, scalar_prefetch = 0 : i64, scratch_operands = 0 : i64, tpu.core_type = #tpu.core_type<tc>, window_params = [{transform_indices = @transform_0, window_bounds = array<i64: 8, 5, 2>}, {transform_indices = @transform_1, window_bounds = array<i64: 8, 2>}, {transform_indices = @transform_2, window_bounds = array<i64: 8, 2>}, {pipeline_mode = #tpu.pipeline_mode<synchronous>, transform_indices = @transform_3, window_bounds = array<i64: 5, 5>}, {transform_indices = @transform_4, window_bounds = array<i64: 1, 2>}]} {
    %c0 = arith.constant 0 : index
    %c0_0 = arith.constant 0 : index
    %0 = vector.load %arg4[%c0, %c0_0] : memref<5x5xf32, #tpu.memory_space<vmem>>, vector<5x5xf32>
    %1 = vector.shape_cast %0 : vector<5x5xf32> to vector<1x5x5xf32>
    %cst = arith.constant dense<0xFF800000> : vector<1xf32>
    %2 = vector.multi_reduction <maximumf>, %1, %cst [1, 2] : vector<1x5x5xf32> to vector<1xf32>
    %3 = vector.shape_cast %2 : vector<1xf32> to vector<1x1x1xf32>
    %4 = vector.extract %3[0, 0, 0] : f32 from vector<1x1x1xf32>
    %5 = vector.broadcast %4 : f32 to vector<1x1xf32>
    %6 = vector.broadcast %5 : vector<1x1xf32> to vector<5x5xf32>
    %7 = arith.subf %0, %6 : vector<5x5xf32>
    %8 = math.exp %7 : vector<5x5xf32>
    %9 = tpu.iota {dimensions = array<i32: 0>} : vector<5x2xi32>
    %c0_1 = arith.constant 0 : index
    %c0_2 = arith.constant 0 : index
    %c0_3 = arith.constant 0 : index
    %10 = vector.load %arg1[%c0_1, %c0_2, %c0_3] : memref<8x5x2xf32, #tpu.memory_space<vmem>>, vector<1x5x2xf32>
    %11 = vector.shape_cast %10 : vector<1x5x2xf32> to vector<5x2xf32>
    %c0_4 = arith.constant 0 : index
    %c0_5 = arith.constant 0 : index
    %12 = vector.load %arg2[%c0_4, %c0_5] : memref<8x2xi32, #tpu.memory_space<vmem>>, vector<1x2xi32>
    %c0_6 = arith.constant 0 : index
    %c0_7 = arith.constant 0 : index
    %13 = vector.load %arg3[%c0_6, %c0_7] : memref<8x2xf32, #tpu.memory_space<vmem>>, vector<1x2xf32>
    %14 = vector.broadcast %12 : vector<1x2xi32> to vector<5x2xi32>
    %15 = arith.cmpi eq, %9, %14 : vector<5x2xi32>
    %16 = arith.extui %15 : vector<5x2xi1> to vector<5x2xi32>
    %17 = arith.sitofp %16 : vector<5x2xi32> to vector<5x2xf32>
    %18 = arith.mulf %17, %11 : vector<5x2xf32>
    %cst_8 = arith.constant dense<0.000000e+00> : vector<2xf32>
    %19 = vector.multi_reduction <add>, %18, %cst_8 [0] : vector<5x2xf32> to vector<2xf32>
    %20 = vector.shape_cast %19 : vector<2xf32> to vector<1x2xf32>
    %21 = arith.mulf %20, %13 : vector<1x2xf32>
    %c1_i32 = arith.constant 1 : i32
    %22 = arith.index_cast %c1_i32 : i32 to index
    %c0_9 = arith.constant 0 : index
    %c0_10 = arith.constant 0 : index
    %23 = vector.load %arg1[%22, %c0_9, %c0_10] : memref<8x5x2xf32, #tpu.memory_space<vmem>>, vector<1x5x2xf32>
    %24 = vector.shape_cast %23 : vector<1x5x2xf32> to vector<5x2xf32>
    %25 = arith.index_cast %c1_i32 : i32 to index
    %c0_11 = arith.constant 0 : index
    %26 = vector.load %arg2[%25, %c0_11] : memref<8x2xi32, #tpu.memory_space<vmem>>, vector<1x2xi32>
    %27 = arith.index_cast %c1_i32 : i32 to index
    %c0_12 = arith.constant 0 : index
    %28 = vector.load %arg3[%27, %c0_12] : memref<8x2xf32, #tpu.memory_space<vmem>>, vector<1x2xf32>
    %29 = vector.broadcast %26 : vector<1x2xi32> to vector<5x2xi32>
    %30 = arith.cmpi eq, %9, %29 : vector<5x2xi32>
    %31 = arith.extui %30 : vector<5x2xi1> to vector<5x2xi32>
    %32 = arith.sitofp %31 : vector<5x2xi32> to vector<5x2xf32>
    %33 = arith.mulf %32, %24 : vector<5x2xf32>
    %cst_13 = arith.constant dense<0.000000e+00> : vector<2xf32>
    %34 = vector.multi_reduction <add>, %33, %cst_13 [0] : vector<5x2xf32> to vector<2xf32>
    %35 = vector.shape_cast %34 : vector<2xf32> to vector<1x2xf32>
    %cst_14 = arith.constant dense<0.000000e+00> : vector<5x2xf32>
    %36 = tpu.matmul %0, %17, %cst_14 {dimension_numbers = #tpu.dot_dimension_numbers<[1], [0], [0], [1], [0, 0, 1, 1], [], []>} : vector<5x5xf32>, vector<5x2xf32>, vector<5x2xf32> -> vector<5x2xf32>
    %37 = arith.mulf %36, %32 : vector<5x2xf32>
    %cst_15 = arith.constant dense<0.000000e+00> : vector<2xf32>
    %38 = vector.multi_reduction <add>, %37, %cst_15 [0] : vector<5x2xf32> to vector<2xf32>
    %39 = vector.shape_cast %38 : vector<2xf32> to vector<1x2xf32>
    %40 = arith.addf %35, %39 : vector<1x2xf32>
    %41 = arith.mulf %40, %28 : vector<1x2xf32>
    %42 = arith.addf %21, %41 : vector<1x2xf32>
    %cst_16 = arith.constant dense<0xFF800000> : vector<2xf32>
    %43 = vector.multi_reduction <maximumf>, %11, %cst_16 [0] : vector<5x2xf32> to vector<2xf32>
    %44 = vector.shape_cast %43 : vector<2xf32> to vector<1x2xf32>
    %45 = vector.broadcast %44 : vector<1x2xf32> to vector<5x2xf32>
    %46 = arith.subf %11, %45 : vector<5x2xf32>
    %47 = math.exp %46 : vector<5x2xf32>
    %cst_17 = arith.constant dense<0.000000e+00> : vector<5x2xf32>
    %48 = tpu.matmul %8, %47, %cst_17 {dimension_numbers = #tpu.dot_dimension_numbers<[1], [0], [0], [1], [0, 0, 1, 1], [], []>} : vector<5x5xf32>, vector<5x2xf32>, vector<5x2xf32> -> vector<5x2xf32>
    %49 = vector.broadcast %5 : vector<1x1xf32> to vector<5x2xf32>
    %50 = arith.addf %24, %49 : vector<5x2xf32>
    %51 = vector.broadcast %44 : vector<1x2xf32> to vector<5x2xf32>
    %52 = arith.addf %50, %51 : vector<5x2xf32>
    %53 = math.log %48 : vector<5x2xf32>
    %54 = arith.addf %52, %53 : vector<5x2xf32>
    %cst_18 = arith.constant dense<0.000000e+00> : vector<2xf32>
    %55 = vector.multi_reduction <add>, %47, %cst_18 [0] : vector<5x2xf32> to vector<2xf32>
    %56 = vector.shape_cast %55 : vector<2xf32> to vector<1x2xf32>
    %57 = math.log %56 : vector<1x2xf32>
    %58 = arith.addf %44, %57 : vector<1x2xf32>
    %cst_19 = arith.constant 0.000000e+00 : f32
    %59 = vector.broadcast %cst_19 : f32 to vector<1x2xf32>
    %60 = arith.cmpf ogt, %28, %59 : vector<1x2xf32>
    %61 = vector.shape_cast %60 : vector<1x2xi1> to vector<1x2xi1>
    %62 = vector.broadcast %61 : vector<1x2xi1> to vector<5x2xi1>
    %63 = vector.shape_cast %58 : vector<1x2xf32> to vector<1x2xf32>
    %64 = vector.broadcast %63 : vector<1x2xf32> to vector<5x2xf32>
    %65 = arith.select %62, %54, %64 : vector<5x2xi1>, vector<5x2xf32>
    %c2_i32 = arith.constant 2 : i32
    %66 = arith.index_cast %c2_i32 : i32 to index
    %c0_20 = arith.constant 0 : index
    %c0_21 = arith.constant 0 : index
    %67 = vector.load %arg1[%66, %c0_20, %c0_21] : memref<8x5x2xf32, #tpu.memory_space<vmem>>, vector<1x5x2xf32>
    %68 = vector.shape_cast %67 : vector<1x5x2xf32> to vector<5x2xf32>
    %69 = arith.index_cast %c2_i32 : i32 to index
    %c0_22 = arith.constant 0 : index
    %70 = vector.load %arg2[%69, %c0_22] : memref<8x2xi32, #tpu.memory_space<vmem>>, vector<1x2xi32>
    %71 = arith.index_cast %c2_i32 : i32 to index
    %c0_23 = arith.constant 0 : index
    %72 = vector.load %arg3[%71, %c0_23] : memref<8x2xf32, #tpu.memory_space<vmem>>, vector<1x2xf32>
    %73 = vector.broadcast %70 : vector<1x2xi32> to vector<5x2xi32>
    %74 = arith.cmpi eq, %9, %73 : vector<5x2xi32>
    %75 = arith.extui %74 : vector<5x2xi1> to vector<5x2xi32>
    %76 = arith.sitofp %75 : vector<5x2xi32> to vector<5x2xf32>
    %77 = arith.mulf %76, %68 : vector<5x2xf32>
    %cst_24 = arith.constant dense<0.000000e+00> : vector<2xf32>
    %78 = vector.multi_reduction <add>, %77, %cst_24 [0] : vector<5x2xf32> to vector<2xf32>
    %79 = vector.shape_cast %78 : vector<2xf32> to vector<1x2xf32>
    %cst_25 = arith.constant dense<0.000000e+00> : vector<5x2xf32>
    %80 = tpu.matmul %0, %32, %cst_25 {dimension_numbers = #tpu.dot_dimension_numbers<[1], [0], [0], [1], [0, 0, 1, 1], [], []>} : vector<5x5xf32>, vector<5x2xf32>, vector<5x2xf32> -> vector<5x2xf32>
    %81 = arith.mulf %80, %76 : vector<5x2xf32>
    %cst_26 = arith.constant dense<0.000000e+00> : vector<2xf32>
    %82 = vector.multi_reduction <add>, %81, %cst_26 [0] : vector<5x2xf32> to vector<2xf32>
    %83 = vector.shape_cast %82 : vector<2xf32> to vector<1x2xf32>
    %84 = arith.addf %79, %83 : vector<1x2xf32>
    %85 = arith.mulf %84, %72 : vector<1x2xf32>
    %86 = arith.addf %42, %85 : vector<1x2xf32>
    %cst_27 = arith.constant dense<0xFF800000> : vector<2xf32>
    %87 = vector.multi_reduction <maximumf>, %65, %cst_27 [0] : vector<5x2xf32> to vector<2xf32>
    %88 = vector.shape_cast %87 : vector<2xf32> to vector<1x2xf32>
    %89 = vector.broadcast %88 : vector<1x2xf32> to vector<5x2xf32>
    %90 = arith.subf %65, %89 : vector<5x2xf32>
    %91 = math.exp %90 : vector<5x2xf32>
    %cst_28 = arith.constant dense<0.000000e+00> : vector<5x2xf32>
    %92 = tpu.matmul %8, %91, %cst_28 {dimension_numbers = #tpu.dot_dimension_numbers<[1], [0], [0], [1], [0, 0, 1, 1], [], []>} : vector<5x5xf32>, vector<5x2xf32>, vector<5x2xf32> -> vector<5x2xf32>
    %93 = vector.broadcast %5 : vector<1x1xf32> to vector<5x2xf32>
    %94 = arith.addf %68, %93 : vector<5x2xf32>
    %95 = vector.broadcast %88 : vector<1x2xf32> to vector<5x2xf32>
    %96 = arith.addf %94, %95 : vector<5x2xf32>
    %97 = math.log %92 : vector<5x2xf32>
    %98 = arith.addf %96, %97 : vector<5x2xf32>
    %cst_29 = arith.constant dense<0.000000e+00> : vector<2xf32>
    %99 = vector.multi_reduction <add>, %91, %cst_29 [0] : vector<5x2xf32> to vector<2xf32>
    %100 = vector.shape_cast %99 : vector<2xf32> to vector<1x2xf32>
    %101 = math.log %100 : vector<1x2xf32>
    %102 = arith.addf %88, %101 : vector<1x2xf32>
    %cst_30 = arith.constant 0.000000e+00 : f32
    %103 = vector.broadcast %cst_30 : f32 to vector<1x2xf32>
    %104 = arith.cmpf ogt, %72, %103 : vector<1x2xf32>
    %105 = vector.shape_cast %104 : vector<1x2xi1> to vector<1x2xi1>
    %106 = vector.broadcast %105 : vector<1x2xi1> to vector<5x2xi1>
    %107 = vector.shape_cast %102 : vector<1x2xf32> to vector<1x2xf32>
    %108 = vector.broadcast %107 : vector<1x2xf32> to vector<5x2xf32>
    %109 = arith.select %106, %98, %108 : vector<5x2xi1>, vector<5x2xf32>
    %c3_i32 = arith.constant 3 : i32
    %110 = arith.index_cast %c3_i32 : i32 to index
    %c0_31 = arith.constant 0 : index
    %c0_32 = arith.constant 0 : index
    %111 = vector.load %arg1[%110, %c0_31, %c0_32] : memref<8x5x2xf32, #tpu.memory_space<vmem>>, vector<1x5x2xf32>
    %112 = vector.shape_cast %111 : vector<1x5x2xf32> to vector<5x2xf32>
    %113 = arith.index_cast %c3_i32 : i32 to index
    %c0_33 = arith.constant 0 : index
    %114 = vector.load %arg2[%113, %c0_33] : memref<8x2xi32, #tpu.memory_space<vmem>>, vector<1x2xi32>
    %115 = arith.index_cast %c3_i32 : i32 to index
    %c0_34 = arith.constant 0 : index
    %116 = vector.load %arg3[%115, %c0_34] : memref<8x2xf32, #tpu.memory_space<vmem>>, vector<1x2xf32>
    %117 = vector.broadcast %114 : vector<1x2xi32> to vector<5x2xi32>
    %118 = arith.cmpi eq, %9, %117 : vector<5x2xi32>
    %119 = arith.extui %118 : vector<5x2xi1> to vector<5x2xi32>
    %120 = arith.sitofp %119 : vector<5x2xi32> to vector<5x2xf32>
    %121 = arith.mulf %120, %112 : vector<5x2xf32>
    %cst_35 = arith.constant dense<0.000000e+00> : vector<2xf32>
    %122 = vector.multi_reduction <add>, %121, %cst_35 [0] : vector<5x2xf32> to vector<2xf32>
    %123 = vector.shape_cast %122 : vector<2xf32> to vector<1x2xf32>
    %cst_36 = arith.constant dense<0.000000e+00> : vector<5x2xf32>
    %124 = tpu.matmul %0, %76, %cst_36 {dimension_numbers = #tpu.dot_dimension_numbers<[1], [0], [0], [1], [0, 0, 1, 1], [], []>} : vector<5x5xf32>, vector<5x2xf32>, vector<5x2xf32> -> vector<5x2xf32>
    %125 = arith.mulf %124, %120 : vector<5x2xf32>
    %cst_37 = arith.constant dense<0.000000e+00> : vector<2xf32>
    %126 = vector.multi_reduction <add>, %125, %cst_37 [0] : vector<5x2xf32> to vector<2xf32>
    %127 = vector.shape_cast %126 : vector<2xf32> to vector<1x2xf32>
    %128 = arith.addf %123, %127 : vector<1x2xf32>
    %129 = arith.mulf %128, %116 : vector<1x2xf32>
    %130 = arith.addf %86, %129 : vector<1x2xf32>
    %cst_38 = arith.constant dense<0xFF800000> : vector<2xf32>
    %131 = vector.multi_reduction <maximumf>, %109, %cst_38 [0] : vector<5x2xf32> to vector<2xf32>
    %132 = vector.shape_cast %131 : vector<2xf32> to vector<1x2xf32>
    %133 = vector.broadcast %132 : vector<1x2xf32> to vector<5x2xf32>
    %134 = arith.subf %109, %133 : vector<5x2xf32>
    %135 = math.exp %134 : vector<5x2xf32>
    %cst_39 = arith.constant dense<0.000000e+00> : vector<5x2xf32>
    %136 = tpu.matmul %8, %135, %cst_39 {dimension_numbers = #tpu.dot_dimension_numbers<[1], [0], [0], [1], [0, 0, 1, 1], [], []>} : vector<5x5xf32>, vector<5x2xf32>, vector<5x2xf32> -> vector<5x2xf32>
    %137 = vector.broadcast %5 : vector<1x1xf32> to vector<5x2xf32>
    %138 = arith.addf %112, %137 : vector<5x2xf32>
    %139 = vector.broadcast %132 : vector<1x2xf32> to vector<5x2xf32>
    %140 = arith.addf %138, %139 : vector<5x2xf32>
    %141 = math.log %136 : vector<5x2xf32>
    %142 = arith.addf %140, %141 : vector<5x2xf32>
    %cst_40 = arith.constant dense<0.000000e+00> : vector<2xf32>
    %143 = vector.multi_reduction <add>, %135, %cst_40 [0] : vector<5x2xf32> to vector<2xf32>
    %144 = vector.shape_cast %143 : vector<2xf32> to vector<1x2xf32>
    %145 = math.log %144 : vector<1x2xf32>
    %146 = arith.addf %132, %145 : vector<1x2xf32>
    %cst_41 = arith.constant 0.000000e+00 : f32
    %147 = vector.broadcast %cst_41 : f32 to vector<1x2xf32>
    %148 = arith.cmpf ogt, %116, %147 : vector<1x2xf32>
    %149 = vector.shape_cast %148 : vector<1x2xi1> to vector<1x2xi1>
    %150 = vector.broadcast %149 : vector<1x2xi1> to vector<5x2xi1>
    %151 = vector.shape_cast %146 : vector<1x2xf32> to vector<1x2xf32>
    %152 = vector.broadcast %151 : vector<1x2xf32> to vector<5x2xf32>
    %153 = arith.select %150, %142, %152 : vector<5x2xi1>, vector<5x2xf32>
    %c4_i32 = arith.constant 4 : i32
    %154 = arith.index_cast %c4_i32 : i32 to index
    %c0_42 = arith.constant 0 : index
    %c0_43 = arith.constant 0 : index
    %155 = vector.load %arg1[%154, %c0_42, %c0_43] : memref<8x5x2xf32, #tpu.memory_space<vmem>>, vector<1x5x2xf32>
    %156 = vector.shape_cast %155 : vector<1x5x2xf32> to vector<5x2xf32>
    %157 = arith.index_cast %c4_i32 : i32 to index
    %c0_44 = arith.constant 0 : index
    %158 = vector.load %arg2[%157, %c0_44] : memref<8x2xi32, #tpu.memory_space<vmem>>, vector<1x2xi32>
    %159 = arith.index_cast %c4_i32 : i32 to index
    %c0_45 = arith.constant 0 : index
    %160 = vector.load %arg3[%159, %c0_45] : memref<8x2xf32, #tpu.memory_space<vmem>>, vector<1x2xf32>
    %161 = vector.broadcast %158 : vector<1x2xi32> to vector<5x2xi32>
    %162 = arith.cmpi eq, %9, %161 : vector<5x2xi32>
    %163 = arith.extui %162 : vector<5x2xi1> to vector<5x2xi32>
    %164 = arith.sitofp %163 : vector<5x2xi32> to vector<5x2xf32>
    %165 = arith.mulf %164, %156 : vector<5x2xf32>
    %cst_46 = arith.constant dense<0.000000e+00> : vector<2xf32>
    %166 = vector.multi_reduction <add>, %165, %cst_46 [0] : vector<5x2xf32> to vector<2xf32>
    %167 = vector.shape_cast %166 : vector<2xf32> to vector<1x2xf32>
    %cst_47 = arith.constant dense<0.000000e+00> : vector<5x2xf32>
    %168 = tpu.matmul %0, %120, %cst_47 {dimension_numbers = #tpu.dot_dimension_numbers<[1], [0], [0], [1], [0, 0, 1, 1], [], []>} : vector<5x5xf32>, vector<5x2xf32>, vector<5x2xf32> -> vector<5x2xf32>
    %169 = arith.mulf %168, %164 : vector<5x2xf32>
    %cst_48 = arith.constant dense<0.000000e+00> : vector<2xf32>
    %170 = vector.multi_reduction <add>, %169, %cst_48 [0] : vector<5x2xf32> to vector<2xf32>
    %171 = vector.shape_cast %170 : vector<2xf32> to vector<1x2xf32>
    %172 = arith.addf %167, %171 : vector<1x2xf32>
    %173 = arith.mulf %172, %160 : vector<1x2xf32>
    %174 = arith.addf %130, %173 : vector<1x2xf32>
    %cst_49 = arith.constant dense<0xFF800000> : vector<2xf32>
    %175 = vector.multi_reduction <maximumf>, %153, %cst_49 [0] : vector<5x2xf32> to vector<2xf32>
    %176 = vector.shape_cast %175 : vector<2xf32> to vector<1x2xf32>
    %177 = vector.broadcast %176 : vector<1x2xf32> to vector<5x2xf32>
    %178 = arith.subf %153, %177 : vector<5x2xf32>
    %179 = math.exp %178 : vector<5x2xf32>
    %cst_50 = arith.constant dense<0.000000e+00> : vector<5x2xf32>
    %180 = tpu.matmul %8, %179, %cst_50 {dimension_numbers = #tpu.dot_dimension_numbers<[1], [0], [0], [1], [0, 0, 1, 1], [], []>} : vector<5x5xf32>, vector<5x2xf32>, vector<5x2xf32> -> vector<5x2xf32>
    %181 = vector.broadcast %5 : vector<1x1xf32> to vector<5x2xf32>
    %182 = arith.addf %156, %181 : vector<5x2xf32>
    %183 = vector.broadcast %176 : vector<1x2xf32> to vector<5x2xf32>
    %184 = arith.addf %182, %183 : vector<5x2xf32>
    %185 = math.log %180 : vector<5x2xf32>
    %186 = arith.addf %184, %185 : vector<5x2xf32>
    %cst_51 = arith.constant dense<0.000000e+00> : vector<2xf32>
    %187 = vector.multi_reduction <add>, %179, %cst_51 [0] : vector<5x2xf32> to vector<2xf32>
    %188 = vector.shape_cast %187 : vector<2xf32> to vector<1x2xf32>
    %189 = math.log %188 : vector<1x2xf32>
    %190 = arith.addf %176, %189 : vector<1x2xf32>
    %cst_52 = arith.constant 0.000000e+00 : f32
    %191 = vector.broadcast %cst_52 : f32 to vector<1x2xf32>
    %192 = arith.cmpf ogt, %160, %191 : vector<1x2xf32>
    %193 = vector.shape_cast %192 : vector<1x2xi1> to vector<1x2xi1>
    %194 = vector.broadcast %193 : vector<1x2xi1> to vector<5x2xi1>
    %195 = vector.shape_cast %190 : vector<1x2xf32> to vector<1x2xf32>
    %196 = vector.broadcast %195 : vector<1x2xf32> to vector<5x2xf32>
    %197 = arith.select %194, %186, %196 : vector<5x2xi1>, vector<5x2xf32>
    %c5_i32 = arith.constant 5 : i32
    %198 = arith.index_cast %c5_i32 : i32 to index
    %c0_53 = arith.constant 0 : index
    %c0_54 = arith.constant 0 : index
    %199 = vector.load %arg1[%198, %c0_53, %c0_54] : memref<8x5x2xf32, #tpu.memory_space<vmem>>, vector<1x5x2xf32>
    %200 = vector.shape_cast %199 : vector<1x5x2xf32> to vector<5x2xf32>
    %201 = arith.index_cast %c5_i32 : i32 to index
    %c0_55 = arith.constant 0 : index
    %202 = vector.load %arg2[%201, %c0_55] : memref<8x2xi32, #tpu.memory_space<vmem>>, vector<1x2xi32>
    %203 = arith.index_cast %c5_i32 : i32 to index
    %c0_56 = arith.constant 0 : index
    %204 = vector.load %arg3[%203, %c0_56] : memref<8x2xf32, #tpu.memory_space<vmem>>, vector<1x2xf32>
    %205 = vector.broadcast %202 : vector<1x2xi32> to vector<5x2xi32>
    %206 = arith.cmpi eq, %9, %205 : vector<5x2xi32>
    %207 = arith.extui %206 : vector<5x2xi1> to vector<5x2xi32>
    %208 = arith.sitofp %207 : vector<5x2xi32> to vector<5x2xf32>
    %209 = arith.mulf %208, %200 : vector<5x2xf32>
    %cst_57 = arith.constant dense<0.000000e+00> : vector<2xf32>
    %210 = vector.multi_reduction <add>, %209, %cst_57 [0] : vector<5x2xf32> to vector<2xf32>
    %211 = vector.shape_cast %210 : vector<2xf32> to vector<1x2xf32>
    %cst_58 = arith.constant dense<0.000000e+00> : vector<5x2xf32>
    %212 = tpu.matmul %0, %164, %cst_58 {dimension_numbers = #tpu.dot_dimension_numbers<[1], [0], [0], [1], [0, 0, 1, 1], [], []>} : vector<5x5xf32>, vector<5x2xf32>, vector<5x2xf32> -> vector<5x2xf32>
    %213 = arith.mulf %212, %208 : vector<5x2xf32>
    %cst_59 = arith.constant dense<0.000000e+00> : vector<2xf32>
    %214 = vector.multi_reduction <add>, %213, %cst_59 [0] : vector<5x2xf32> to vector<2xf32>
    %215 = vector.shape_cast %214 : vector<2xf32> to vector<1x2xf32>
    %216 = arith.addf %211, %215 : vector<1x2xf32>
    %217 = arith.mulf %216, %204 : vector<1x2xf32>
    %218 = arith.addf %174, %217 : vector<1x2xf32>
    %cst_60 = arith.constant dense<0xFF800000> : vector<2xf32>
    %219 = vector.multi_reduction <maximumf>, %197, %cst_60 [0] : vector<5x2xf32> to vector<2xf32>
    %220 = vector.shape_cast %219 : vector<2xf32> to vector<1x2xf32>
    %221 = vector.broadcast %220 : vector<1x2xf32> to vector<5x2xf32>
    %222 = arith.subf %197, %221 : vector<5x2xf32>
    %223 = math.exp %222 : vector<5x2xf32>
    %cst_61 = arith.constant dense<0.000000e+00> : vector<5x2xf32>
    %224 = tpu.matmul %8, %223, %cst_61 {dimension_numbers = #tpu.dot_dimension_numbers<[1], [0], [0], [1], [0, 0, 1, 1], [], []>} : vector<5x5xf32>, vector<5x2xf32>, vector<5x2xf32> -> vector<5x2xf32>
    %225 = vector.broadcast %5 : vector<1x1xf32> to vector<5x2xf32>
    %226 = arith.addf %200, %225 : vector<5x2xf32>
    %227 = vector.broadcast %220 : vector<1x2xf32> to vector<5x2xf32>
    %228 = arith.addf %226, %227 : vector<5x2xf32>
    %229 = math.log %224 : vector<5x2xf32>
    %230 = arith.addf %228, %229 : vector<5x2xf32>
    %cst_62 = arith.constant dense<0.000000e+00> : vector<2xf32>
    %231 = vector.multi_reduction <add>, %223, %cst_62 [0] : vector<5x2xf32> to vector<2xf32>
    %232 = vector.shape_cast %231 : vector<2xf32> to vector<1x2xf32>
    %233 = math.log %232 : vector<1x2xf32>
    %234 = arith.addf %220, %233 : vector<1x2xf32>
    %cst_63 = arith.constant 0.000000e+00 : f32
    %235 = vector.broadcast %cst_63 : f32 to vector<1x2xf32>
    %236 = arith.cmpf ogt, %204, %235 : vector<1x2xf32>
    %237 = vector.shape_cast %236 : vector<1x2xi1> to vector<1x2xi1>
    %238 = vector.broadcast %237 : vector<1x2xi1> to vector<5x2xi1>
    %239 = vector.shape_cast %234 : vector<1x2xf32> to vector<1x2xf32>
    %240 = vector.broadcast %239 : vector<1x2xf32> to vector<5x2xf32>
    %241 = arith.select %238, %230, %240 : vector<5x2xi1>, vector<5x2xf32>
    %c6_i32 = arith.constant 6 : i32
    %242 = arith.index_cast %c6_i32 : i32 to index
    %c0_64 = arith.constant 0 : index
    %c0_65 = arith.constant 0 : index
    %243 = vector.load %arg1[%242, %c0_64, %c0_65] : memref<8x5x2xf32, #tpu.memory_space<vmem>>, vector<1x5x2xf32>
    %244 = vector.shape_cast %243 : vector<1x5x2xf32> to vector<5x2xf32>
    %245 = arith.index_cast %c6_i32 : i32 to index
    %c0_66 = arith.constant 0 : index
    %246 = vector.load %arg2[%245, %c0_66] : memref<8x2xi32, #tpu.memory_space<vmem>>, vector<1x2xi32>
    %247 = arith.index_cast %c6_i32 : i32 to index
    %c0_67 = arith.constant 0 : index
    %248 = vector.load %arg3[%247, %c0_67] : memref<8x2xf32, #tpu.memory_space<vmem>>, vector<1x2xf32>
    %249 = vector.broadcast %246 : vector<1x2xi32> to vector<5x2xi32>
    %250 = arith.cmpi eq, %9, %249 : vector<5x2xi32>
    %251 = arith.extui %250 : vector<5x2xi1> to vector<5x2xi32>
    %252 = arith.sitofp %251 : vector<5x2xi32> to vector<5x2xf32>
    %253 = arith.mulf %252, %244 : vector<5x2xf32>
    %cst_68 = arith.constant dense<0.000000e+00> : vector<2xf32>
    %254 = vector.multi_reduction <add>, %253, %cst_68 [0] : vector<5x2xf32> to vector<2xf32>
    %255 = vector.shape_cast %254 : vector<2xf32> to vector<1x2xf32>
    %cst_69 = arith.constant dense<0.000000e+00> : vector<5x2xf32>
    %256 = tpu.matmul %0, %208, %cst_69 {dimension_numbers = #tpu.dot_dimension_numbers<[1], [0], [0], [1], [0, 0, 1, 1], [], []>} : vector<5x5xf32>, vector<5x2xf32>, vector<5x2xf32> -> vector<5x2xf32>
    %257 = arith.mulf %256, %252 : vector<5x2xf32>
    %cst_70 = arith.constant dense<0.000000e+00> : vector<2xf32>
    %258 = vector.multi_reduction <add>, %257, %cst_70 [0] : vector<5x2xf32> to vector<2xf32>
    %259 = vector.shape_cast %258 : vector<2xf32> to vector<1x2xf32>
    %260 = arith.addf %255, %259 : vector<1x2xf32>
    %261 = arith.mulf %260, %248 : vector<1x2xf32>
    %262 = arith.addf %218, %261 : vector<1x2xf32>
    %cst_71 = arith.constant dense<0xFF800000> : vector<2xf32>
    %263 = vector.multi_reduction <maximumf>, %241, %cst_71 [0] : vector<5x2xf32> to vector<2xf32>
    %264 = vector.shape_cast %263 : vector<2xf32> to vector<1x2xf32>
    %265 = vector.broadcast %264 : vector<1x2xf32> to vector<5x2xf32>
    %266 = arith.subf %241, %265 : vector<5x2xf32>
    %267 = math.exp %266 : vector<5x2xf32>
    %cst_72 = arith.constant dense<0.000000e+00> : vector<5x2xf32>
    %268 = tpu.matmul %8, %267, %cst_72 {dimension_numbers = #tpu.dot_dimension_numbers<[1], [0], [0], [1], [0, 0, 1, 1], [], []>} : vector<5x5xf32>, vector<5x2xf32>, vector<5x2xf32> -> vector<5x2xf32>
    %269 = vector.broadcast %5 : vector<1x1xf32> to vector<5x2xf32>
    %270 = arith.addf %244, %269 : vector<5x2xf32>
    %271 = vector.broadcast %264 : vector<1x2xf32> to vector<5x2xf32>
    %272 = arith.addf %270, %271 : vector<5x2xf32>
    %273 = math.log %268 : vector<5x2xf32>
    %274 = arith.addf %272, %273 : vector<5x2xf32>
    %cst_73 = arith.constant dense<0.000000e+00> : vector<2xf32>
    %275 = vector.multi_reduction <add>, %267, %cst_73 [0] : vector<5x2xf32> to vector<2xf32>
    %276 = vector.shape_cast %275 : vector<2xf32> to vector<1x2xf32>
    %277 = math.log %276 : vector<1x2xf32>
    %278 = arith.addf %264, %277 : vector<1x2xf32>
    %cst_74 = arith.constant 0.000000e+00 : f32
    %279 = vector.broadcast %cst_74 : f32 to vector<1x2xf32>
    %280 = arith.cmpf ogt, %248, %279 : vector<1x2xf32>
    %281 = vector.shape_cast %280 : vector<1x2xi1> to vector<1x2xi1>
    %282 = vector.broadcast %281 : vector<1x2xi1> to vector<5x2xi1>
    %283 = vector.shape_cast %278 : vector<1x2xf32> to vector<1x2xf32>
    %284 = vector.broadcast %283 : vector<1x2xf32> to vector<5x2xf32>
    %285 = arith.select %282, %274, %284 : vector<5x2xi1>, vector<5x2xf32>
    %c7_i32 = arith.constant 7 : i32
    %286 = arith.index_cast %c7_i32 : i32 to index
    %c0_75 = arith.constant 0 : index
    %c0_76 = arith.constant 0 : index
    %287 = vector.load %arg1[%286, %c0_75, %c0_76] : memref<8x5x2xf32, #tpu.memory_space<vmem>>, vector<1x5x2xf32>
    %288 = vector.shape_cast %287 : vector<1x5x2xf32> to vector<5x2xf32>
    %289 = arith.index_cast %c7_i32 : i32 to index
    %c0_77 = arith.constant 0 : index
    %290 = vector.load %arg2[%289, %c0_77] : memref<8x2xi32, #tpu.memory_space<vmem>>, vector<1x2xi32>
    %291 = arith.index_cast %c7_i32 : i32 to index
    %c0_78 = arith.constant 0 : index
    %292 = vector.load %arg3[%291, %c0_78] : memref<8x2xf32, #tpu.memory_space<vmem>>, vector<1x2xf32>
    %293 = vector.broadcast %290 : vector<1x2xi32> to vector<5x2xi32>
    %294 = arith.cmpi eq, %9, %293 : vector<5x2xi32>
    %295 = arith.extui %294 : vector<5x2xi1> to vector<5x2xi32>
    %296 = arith.sitofp %295 : vector<5x2xi32> to vector<5x2xf32>
    %297 = arith.mulf %296, %288 : vector<5x2xf32>
    %cst_79 = arith.constant dense<0.000000e+00> : vector<2xf32>
    %298 = vector.multi_reduction <add>, %297, %cst_79 [0] : vector<5x2xf32> to vector<2xf32>
    %299 = vector.shape_cast %298 : vector<2xf32> to vector<1x2xf32>
    %cst_80 = arith.constant dense<0.000000e+00> : vector<5x2xf32>
    %300 = tpu.matmul %0, %252, %cst_80 {dimension_numbers = #tpu.dot_dimension_numbers<[1], [0], [0], [1], [0, 0, 1, 1], [], []>} : vector<5x5xf32>, vector<5x2xf32>, vector<5x2xf32> -> vector<5x2xf32>
    %301 = arith.mulf %300, %296 : vector<5x2xf32>
    %cst_81 = arith.constant dense<0.000000e+00> : vector<2xf32>
    %302 = vector.multi_reduction <add>, %301, %cst_81 [0] : vector<5x2xf32> to vector<2xf32>
    %303 = vector.shape_cast %302 : vector<2xf32> to vector<1x2xf32>
    %304 = arith.addf %299, %303 : vector<1x2xf32>
    %305 = arith.mulf %304, %292 : vector<1x2xf32>
    %306 = arith.addf %262, %305 : vector<1x2xf32>
    %cst_82 = arith.constant dense<0xFF800000> : vector<2xf32>
    %307 = vector.multi_reduction <maximumf>, %285, %cst_82 [0] : vector<5x2xf32> to vector<2xf32>
    %308 = vector.shape_cast %307 : vector<2xf32> to vector<1x2xf32>
    %309 = vector.broadcast %308 : vector<1x2xf32> to vector<5x2xf32>
    %310 = arith.subf %285, %309 : vector<5x2xf32>
    %311 = math.exp %310 : vector<5x2xf32>
    %cst_83 = arith.constant dense<0.000000e+00> : vector<5x2xf32>
    %312 = tpu.matmul %8, %311, %cst_83 {dimension_numbers = #tpu.dot_dimension_numbers<[1], [0], [0], [1], [0, 0, 1, 1], [], []>} : vector<5x5xf32>, vector<5x2xf32>, vector<5x2xf32> -> vector<5x2xf32>
    %313 = vector.broadcast %5 : vector<1x1xf32> to vector<5x2xf32>
    %314 = arith.addf %288, %313 : vector<5x2xf32>
    %315 = vector.broadcast %308 : vector<1x2xf32> to vector<5x2xf32>
    %316 = arith.addf %314, %315 : vector<5x2xf32>
    %317 = math.log %312 : vector<5x2xf32>
    %318 = arith.addf %316, %317 : vector<5x2xf32>
    %cst_84 = arith.constant dense<0.000000e+00> : vector<2xf32>
    %319 = vector.multi_reduction <add>, %311, %cst_84 [0] : vector<5x2xf32> to vector<2xf32>
    %320 = vector.shape_cast %319 : vector<2xf32> to vector<1x2xf32>
    %321 = math.log %320 : vector<1x2xf32>
    %322 = arith.addf %308, %321 : vector<1x2xf32>
    %cst_85 = arith.constant 0.000000e+00 : f32
    %323 = vector.broadcast %cst_85 : f32 to vector<1x2xf32>
    %324 = arith.cmpf ogt, %292, %323 : vector<1x2xf32>
    %325 = vector.shape_cast %324 : vector<1x2xi1> to vector<1x2xi1>
    %326 = vector.broadcast %325 : vector<1x2xi1> to vector<5x2xi1>
    %327 = vector.shape_cast %322 : vector<1x2xf32> to vector<1x2xf32>
    %328 = vector.broadcast %327 : vector<1x2xf32> to vector<5x2xf32>
    %329 = arith.select %326, %318, %328 : vector<5x2xi1>, vector<5x2xf32>
    %c7_i32_86 = arith.constant 7 : i32
    %cst_87 = arith.constant dense<0xFF800000> : vector<2xf32>
    %330 = vector.multi_reduction <maximumf>, %329, %cst_87 [0] : vector<5x2xf32> to vector<2xf32>
    %331 = vector.shape_cast %330 : vector<2xf32> to vector<1x2xf32>
    %332 = vector.broadcast %331 : vector<1x2xf32> to vector<5x2xf32>
    %333 = arith.subf %329, %332 : vector<5x2xf32>
    %334 = math.exp %333 : vector<5x2xf32>
    %cst_88 = arith.constant dense<0.000000e+00> : vector<2xf32>
    %335 = vector.multi_reduction <add>, %334, %cst_88 [0] : vector<5x2xf32> to vector<2xf32>
    %336 = vector.shape_cast %335 : vector<2xf32> to vector<1x2xf32>
    %337 = math.log %336 : vector<1x2xf32>
    %338 = arith.addf %331, %337 : vector<1x2xf32>
    %339 = arith.subf %338, %306 : vector<1x2xf32>
    %c0_89 = arith.constant 0 : index
    %c0_90 = arith.constant 0 : index
    %340 = vector.load %arg5[%c0_89, %c0_90] : memref<1x2xf32, #tpu.memory_space<vmem>>, vector<1x2xf32>
    tpu.vector_store %arg5[%c0_89, %c0_90], %339 {strides = array<i32>} : memref<1x2xf32, #tpu.memory_space<vmem>>, vector<1x2xf32>,
    return
  }
  func.func @transform_0(%arg0: i32) -> (i32, i32, i32) {
    %c0_i32 = arith.constant 0 : i32
    %c0_i32_0 = arith.constant 0 : i32
    %c0_i32_1 = arith.constant 0 : i32
    return %c0_i32, %c0_i32_0, %arg0 : i32, i32, i32
  }
  func.func @transform_1(%arg0: i32) -> (i32, i32) {
    %c0_i32 = arith.constant 0 : i32
    %c0_i32_0 = arith.constant 0 : i32
    return %c0_i32, %arg0 : i32, i32
  }
  func.func @transform_2(%arg0: i32) -> (i32, i32) {
    %c0_i32 = arith.constant 0 : i32
    %c0_i32_0 = arith.constant 0 : i32
    return %c0_i32, %arg0 : i32, i32
  }
  func.func @transform_3(%arg0: i32) -> (i32, i32) {
    %c0_i32 = arith.constant 0 : i32
    %c0_i32_0 = arith.constant 0 : i32
    %c0_i32_1 = arith.constant 0 : i32
    return %c0_i32, %c0_i32_0 : i32, i32
  }
  func.func @transform_4(%arg0: i32) -> (i32, i32) {
    %c0_i32 = arith.constant 0 : i32
    %c0_i32_0 = arith.constant 0 : i32
    return %c0_i32, %arg0 : i32, i32
  }
}

</mosaic_0001>

<bundles_post_ra>
// kernel: chain_crf_loss.1
= control target key start
LH: loop header
LB: loop body
LE: loop exit
PB: predicated region body
PF: predicated region fallthrough
CT: control target
= control target key end

     0   :  { %vm18_vm0 = vcmask 36864   ;;  %vm43_vm1 = vcmask 12288   ;;  %vm72_vm2 = vcmask 1044480   ;;  %vm68_vm3 = vcmask 39936   ;;  %s1232_s3 = inlined_call_operand.vmem [shape: f32[5,5], index: 3, kind: input, shape index: {}]   ;;  %s1233_s0 = inlined_call_operand.vmem [shape: f32[8,5,2], index: 0, kind: input, shape index: {}]   ;;  %s1234_s2 = inlined_call_operand.vmem [shape: f32[8,2], index: 2, kind: input, shape index: {}]   ;;  %s1235_s1 = inlined_call_operand.vmem [shape: s32[8,2], index: 1, kind: input, shape index: {}]   ;;  %s1236_s4 = inlined_call_operand.vmem [shape: f32[1,2], index: 4, kind: output, shape index: {}]  }
   0x1   :  { %v941_v0 = vld [vmem:[%s1232_s3] sm:$0x1f]  ;;  %v956_v20 = vld [vmem:[%s1233_s0 + $0x38] sm:$0x1f]  ;;  %v980_v36 = vld [vmem:[%s1233_s0 + $0x8] sm:$0x1f] }
   0x2   :  { %v19_v1 = vsel %vm18_vm0, %v941_v0, -inf  ;;  %v947_v9 = vld [vmem:[%s1233_s0] sm:$0x1f]  ;;  %v911_v37 = vmov 0   ;;  %v989_v53 = vld [vmem:[%s1233_s0 + $0x10] sm:$0x1f] }
   0x3   :  { %20 = vmax.xlane.f32.xlu0 %v19_v1  ;;  %v107_v10 = vsel %vm43_vm1, %v947_v9, -inf  ;;  %v974_v33 = vld [vmem:[%s1234_s2 + $0x1] sm:$0x1] }
   0x4   :  { %v108_v11 = vrot.slane %v107_v10, 4  ;;  %vm158_vm4 = vcmp.gt.f32.partialorder %v974_v33, 0.0 }
   0x5   :  { %v159_v38 = vsel %vm158_vm4, 1, %v911_v37 }
   0x6   :  { %v109_v12 = vmax.f32 %v107_v10, %v108_v11  ;;  %v160_v41 = vperm.slane %v159_v38, 0 }
   0x8   :  { %v110_v13 = vrot.slane %v109_v12, 2  ;;  %vm161_vm5 = vcmp.eq.s32.totalorder %v160_v41, 1 }
   0xa   :  { %v111_v14 = vmax.f32 %v109_v12, %v110_v13 }
   0xc   :  { %v112_v15 = vrot.slane %v111_v14, 1 }
   0xe   :  { %v113_v16 = vmax.f32 %v111_v14, %v112_v15 }
  0x10   :  { %v114_v17 = vsub.f32 %v947_v9, %v113_v16 }
  0x12   :  { %v115_v18 = vmul.f32 1.442695, %v114_v17 }
  0x14   :  { %863 = vpow2.f32 %v115_v18 }
  0x1a   :  { %v864_v19 = vpop.eup %863 }
  0x1b   :  { %813 = vmatpush.msk.msra.mxu1 %vm72_vm2, %v864_v19  ;;  %v148_v26 = vsel %vm43_vm1, %v864_v19, 0.0 }
  0x1c   :  { %v149_v27 = vrot.slane %v148_v26, 4 }
  0x1e   :  { %v150_v28 = vadd.f32 %v149_v27, %v148_v26  ;;  %v1008_v26 = vld [vmem:[%s1233_s0 + $0x18] sm:$0x1f] }
  0x20   :  { %v151_v29 = vrot.slane %v150_v28, 2 }
  0x22   :  { %v152_v30 = vadd.f32 %v151_v29, %v150_v28 }
  0x24   :  { %v153_v31 = vrot.slane %v152_v30, 1 }
  0x26   :  { %v154_v32 = vadd.f32 %v153_v31, %v152_v30 }
  0x76   :  { %v21_v2 = vpop.xlane.xlu0 %20 }
  0x77   :  { %v22_v3 = vrot.slane %v21_v2, 4 }
  0x79   :  { %v23_v4 = vmax.f32 %v21_v2, %v22_v3 }
  0x7b   :  { %v24_v5 = vrot.slane %v23_v4, 2 }
  0x7d   :  { %v25_v6 = vmax.f32 %v23_v4, %v24_v5 }
  0x7f   :  { %v26_v7 = vrot.slane %v25_v6, 1 }
  0x81   :  { %v27_v8 = vmax.f32 %v25_v6, %v26_v7 }
  0x83   :  { %851 = vpush %v27_v8  ;;  %v1000_v8 = vld [vmem:[%s1234_s2 + $0x2] sm:$0x1] }
  0x84   :  { %vm261_vm6 = vcmp.gt.f32.partialorder %v1000_v8, 0.0 }
  0x85   :  { %v262_v11 = vsel %vm261_vm6, 1, %v911_v37 }
  0x86   :  { %v263_v12 = vperm.slane %v262_v11, 0 }
  0x88   :  { %vm264_vm7 = vcmp.eq.s32.totalorder %v263_v12, 1 }
  0xb4   :  { %s852_s3 = spop %851 }
  0xb5   :  { %v958_v21 = vstv %s852_s3 }
  0xb6   :  { %v30_v22 = vsub.f32 %v941_v0, %v958_v21  ;;  %v964_v23 = vadd.f32 %v956_v20, %v958_v21  ;;  %v143_v39 = vadd.f32 %v980_v36, %v958_v21  ;;  %v246_v56 = vadd.f32 %v989_v53, %v958_v21 }
  0xb7   :  { %v349_v29 = vadd.f32 %v1008_v26, %v958_v21 }
  0xb8   :  { %v31_v24 = vmul.f32 1.442695, %v30_v22  ;;  %v144_v43 = vadd.f32 %v143_v39, %v113_v16 }
  0xba   :  { %865 = vpow2.f32 %v31_v24 }
  0xbb   :  { %867 = vlog2.f32 %v154_v32 }
  0xc0   :  { %v966_v25 = vpop.eup %865 }
  0xc1   :  { %814 = vmatmul.msk.f32.vlgmr.msra.gmra.mxu1 %vm68_vm3, %v966_v25  ;;  %v868_v35 = vpop.eup %867 }
  0xc2   :  { %v156_v40 = vmul.f32 0.6931472, %v868_v35 }
  0xc4   :  { %v157_v45 = vadd.f32 %v156_v40, %v113_v16 }
 0x13e   :  { %v140_v34 = vpop.f32.mrf.mxu1 }
 0x13f   :  { %869 = vlog2.f32 %v140_v34 }
 0x145   :  { %v870_v42 = vpop.eup %869 }
 0x146   :  { %v146_v44 = vmul.f32 0.6931472, %v870_v42 }
 0x148   :  { %v147_v46 = vadd.f32 %v146_v44, %v144_v43 }
 0x14a   :  { %v162_v47 = vsel %vm161_vm5, %v147_v46, %v157_v45 }
 0x14b   :  { %v213_v48 = vsel %vm43_vm1, %v162_v47, -inf }
 0x14c   :  { %v214_v49 = vrot.slane %v213_v48, 4 }
 0x14e   :  { %v215_v50 = vmax.f32 %v213_v48, %v214_v49 }
 0x150   :  { %v216_v51 = vrot.slane %v215_v50, 2 }
 0x152   :  { %v217_v52 = vmax.f32 %v215_v50, %v216_v51 }
 0x154   :  { %v218_v54 = vrot.slane %v217_v52, 1 }
 0x156   :  { %v219_v55 = vmax.f32 %v217_v52, %v218_v54 }
 0x158   :  { %v220_v57 = vsub.f32 %v162_v47, %v219_v55  ;;  %v247_v58 = vadd.f32 %v246_v56, %v219_v55  ;;  %v1019_v47 = vld [vmem:[%s1234_s2 + $0x3] sm:$0x1] }
 0x159   :  { %vm364_vm8 = vcmp.gt.f32.partialorder %v1019_v47, 0.0 }
 0x15a   :  { %v221_v59 = vmul.f32 1.442695, %v220_v57  ;;  %v365_v49 = vsel %vm364_vm8, 1, %v911_v37 }
 0x15b   :  { %v366_v50 = vperm.slane %v365_v49, 0 }
 0x15c   :  { %871 = vpow2.f32 %v221_v59 }
 0x15d   :  { %vm367_vm9 = vcmp.eq.s32.totalorder %v366_v50, 1 }
 0x162   :  { %v872_v60 = vpop.eup %871 }
 0x163   :  { %819 = vmatpush.msk.msra.mxu3 %vm72_vm2, %v872_v60  ;;  %v251_v61 = vsel %vm43_vm1, %v872_v60, 0.0 }
 0x164   :  { %v252_v62 = vrot.slane %v251_v61, 4  ;;  %820 = vmatmul.msk.f32.vlgmr.msra.gmra.mxu3 %vm68_vm3, %v966_v25 }
 0x166   :  { %v253_v63 = vadd.f32 %v252_v62, %v251_v61  ;;  %v1027_v61 = vld [vmem:[%s1233_s0 + $0x20] sm:$0x1f] }
 0x168   :  { %v254_v1 = vrot.slane %v253_v63, 2 }
 0x16a   :  { %v255_v2 = vadd.f32 %v254_v1, %v253_v63  ;;  %v452_v1 = vadd.f32 %v1027_v61, %v958_v21 }
 0x16c   :  { %v256_v3 = vrot.slane %v255_v2, 1 }
 0x16e   :  { %v257_v4 = vadd.f32 %v256_v3, %v255_v2 }
 0x170   :  { %873 = vlog2.f32 %v257_v4 }
 0x176   :  { %v874_v5 = vpop.eup %873 }
 0x177   :  { %v259_v6 = vmul.f32 0.6931472, %v874_v5 }
 0x179   :  { %v260_v7 = vadd.f32 %v259_v6, %v219_v55 }
 0x1e7   :  { %v243_v10 = vpop.f32.mrf.mxu3 }
 0x1e8   :  { %875 = vlog2.f32 %v243_v10 }
 0x1ee   :  { %v876_v13 = vpop.eup %875 }
 0x1ef   :  { %v249_v14 = vmul.f32 0.6931472, %v876_v13 }
 0x1f1   :  { %v250_v15 = vadd.f32 %v249_v14, %v247_v58 }
 0x1f3   :  { %v265_v16 = vsel %vm264_vm7, %v250_v15, %v260_v7 }
 0x1f4   :  { %v316_v17 = vsel %vm43_vm1, %v265_v16, -inf }
 0x1f5   :  { %v317_v18 = vrot.slane %v316_v17, 4 }
 0x1f7   :  { %v318_v19 = vmax.f32 %v316_v17, %v317_v18  ;;  %v1038_v18 = vld [vmem:[%s1234_s2 + $0x4] sm:$0x1] }
 0x1f8   :  { %vm467_vm10 = vcmp.gt.f32.partialorder %v1038_v18, 0.0 }
 0x1f9   :  { %v319_v22 = vrot.slane %v318_v19, 2 }
 0x1fb   :  { %v320_v24 = vmax.f32 %v318_v19, %v319_v22  ;;  %v468_v22 = vsel %vm467_vm10, 1, %v911_v37 }
 0x1fd   :  { %v321_v27 = vrot.slane %v320_v24, 1 }
 0x1ff   :  { %v322_v28 = vmax.f32 %v320_v24, %v321_v27  ;;  %v469_v24 = vperm.slane %v468_v22, 0 }
 0x201   :  { %v323_v30 = vsub.f32 %v265_v16, %v322_v28  ;;  %v350_v31 = vadd.f32 %v349_v29, %v322_v28  ;;  %vm470_vm11 = vcmp.eq.s32.totalorder %v469_v24, 1 }
 0x203   :  { %v324_v32 = vmul.f32 1.442695, %v323_v30 }
 0x205   :  { %877 = vpow2.f32 %v324_v32 }
 0x20b   :  { %v878_v34 = vpop.eup %877 }
 0x20c   :  { %v354_v35 = vsel %vm43_vm1, %v878_v34, 0.0  ;;  %825 = vmatpush.msk.msrb.mxu1 %vm72_vm2, %v878_v34 }
 0x20d   :  { %v355_v38 = vrot.slane %v354_v35, 4  ;;  %826 = vmatmul.msk.f32.vlgmr.msrb.gmra.mxu1 %vm68_vm3, %v966_v25 }
 0x20f   :  { %v356_v39 = vadd.f32 %v355_v38, %v354_v35 }
 0x211   :  { %v357_v40 = vrot.slane %v356_v39, 2 }
 0x213   :  { %v358_v41 = vadd.f32 %v357_v40, %v356_v39  ;;  %v1046_v39 = vld [vmem:[%s1233_s0 + $0x28] sm:$0x1f] }
 0x215   :  { %v359_v42 = vrot.slane %v358_v41, 1 }
 0x217   :  { %v360_v43 = vadd.f32 %v359_v42, %v358_v41  ;;  %v555_v42 = vadd.f32 %v1046_v39, %v958_v21 }
 0x219   :  { %879 = vlog2.f32 %v360_v43 }
 0x21f   :  { %v880_v44 = vpop.eup %879 }
 0x220   :  { %v362_v45 = vmul.f32 0.6931472, %v880_v44 }
 0x222   :  { %v363_v46 = vadd.f32 %v362_v45, %v322_v28 }
 0x28a   :  { %v346_v48 = vpop.f32.mrf.mxu1 }
 0x28b   :  { %881 = vlog2.f32 %v346_v48 }
 0x291   :  { %v882_v51 = vpop.eup %881 }
 0x292   :  { %v352_v52 = vmul.f32 0.6931472, %v882_v51 }
 0x294   :  { %v353_v54 = vadd.f32 %v352_v52, %v350_v31 }
 0x296   :  { %v368_v55 = vsel %vm367_vm9, %v353_v54, %v363_v46 }
 0x297   :  { %v419_v56 = vsel %vm43_vm1, %v368_v55, -inf }
 0x298   :  { %v420_v57 = vrot.slane %v419_v56, 4 }
 0x29a   :  { %v421_v58 = vmax.f32 %v419_v56, %v420_v57 }
 0x29c   :  { %v422_v59 = vrot.slane %v421_v58, 2 }
 0x29e   :  { %v423_v60 = vmax.f32 %v421_v58, %v422_v59  ;;  %v1057_v59 = vld [vmem:[%s1234_s2 + $0x5] sm:$0x1] }
 0x29f   :  { %vm570_vm12 = vcmp.gt.f32.partialorder %v1057_v59, 0.0 }
 0x2a0   :  { %v424_v62 = vrot.slane %v423_v60, 1 }
 0x2a2   :  { %v425_v63 = vmax.f32 %v423_v60, %v424_v62  ;;  %v571_v62 = vsel %vm570_vm12, 1, %v911_v37 }
 0x2a4   :  { %v426_v2 = vsub.f32 %v368_v55, %v425_v63  ;;  %v453_v3 = vadd.f32 %v452_v1, %v425_v63 }
 0x2a6   :  { %v427_v4 = vmul.f32 1.442695, %v426_v2 }
 0x2a8   :  { %883 = vpow2.f32 %v427_v4 }
 0x2ae   :  { %v884_v5 = vpop.eup %883 }
 0x2af   :  { %v457_v6 = vsel %vm43_vm1, %v884_v5, 0.0  ;;  %831 = vmatpush.msk.msrb.mxu3 %vm72_vm2, %v884_v5 }
 0x2b0   :  { %v458_v7 = vrot.slane %v457_v6, 4  ;;  %832 = vmatmul.msk.f32.vlgmr.msrb.gmra.mxu3 %vm68_vm3, %v966_v25 }
 0x2b2   :  { %v459_v10 = vadd.f32 %v458_v7, %v457_v6 }
 0x2b4   :  { %v460_v11 = vrot.slane %v459_v10, 2 }
 0x2b6   :  { %v461_v12 = vadd.f32 %v460_v11, %v459_v10 }
 0x2b8   :  { %v462_v13 = vrot.slane %v461_v12, 1 }
 0x2ba   :  { %v463_v14 = vadd.f32 %v462_v13, %v461_v12  ;;  %v1065_v12 = vld [vmem:[%s1233_s0 + $0x30] sm:$0x1f] }
 0x2bc   :  { %885 = vlog2.f32 %v463_v14 }
 0x2c2   :  { %v886_v15 = vpop.eup %885 }
 0x2c3   :  { %v465_v16 = vmul.f32 0.6931472, %v886_v15  ;;  %v658_v15 = vadd.f32 %v1065_v12, %v958_v21 }
 0x2c5   :  { %v466_v17 = vadd.f32 %v465_v16, %v425_v63  ;;  %v572_v63 = vperm.slane %v571_v62, 0 }
 0x2c7   :  { %vm573_vm13 = vcmp.eq.s32.totalorder %v572_v63, 1  ;;  %v860_v63 = vld [vmem:[%s1235_s1 + $0x5] ss:$0 sm:$0xff] }
 0x333   :  { %v449_v19 = vpop.f32.mrf.mxu3 }
 0x334   :  { %887 = vlog2.f32 %v449_v19 }
 0x33a   :  { %v888_v27 = vpop.eup %887 }
 0x33b   :  { %v455_v28 = vmul.f32 0.6931472, %v888_v27 }
 0x33d   :  { %v456_v29 = vadd.f32 %v455_v28, %v453_v3 }
 0x33f   :  { %v471_v30 = vsel %vm470_vm11, %v456_v29, %v466_v17  ;;  %vm802_vm11 = vcmask 8192  }
 0x340   :  { %v522_v31 = vsel %vm43_vm1, %v471_v30, -inf }
 0x341   :  { %v523_v32 = vrot.slane %v522_v31, 4 }
 0x343   :  { %v524_v34 = vmax.f32 %v522_v31, %v523_v32 }
 0x345   :  { %v525_v35 = vrot.slane %v524_v34, 2 }
 0x347   :  { %v526_v38 = vmax.f32 %v524_v34, %v525_v35 }
 0x349   :  { %v527_v40 = vrot.slane %v526_v38, 1 }
 0x34b   :  { %v528_v41 = vmax.f32 %v526_v38, %v527_v40  ;;  %v1076_v38 = vld [vmem:[%s1234_s2 + $0x6] sm:$0x1]  ;;  %v33_v40 = vlaneseq }
 0x34c   :  { %vm673_vm14 = vcmp.gt.f32.partialorder %v1076_v38, 0.0 }
 0x34d   :  { %v529_v43 = vsub.f32 %v471_v30, %v528_v41  ;;  %v556_v44 = vadd.f32 %v555_v42, %v528_v41  ;;  %v855_v42 = vld [vmem:[%s1235_s1] ss:$0 sm:$0xff] }
 0x34f   :  { %v530_v45 = vmul.f32 1.442695, %v529_v43  ;;  %v856_v43 = vld [vmem:[%s1235_s1 + $0x1] ss:$0 sm:$0xff] }
 0x351   :  { %889 = vpow2.f32 %v530_v45  ;;  %v674_v45 = vsel %vm673_vm14, 1, %v911_v37 }
 0x357   :  { %v890_v46 = vpop.eup %889 }
 0x358   :  { %v560_v48 = vsel %vm43_vm1, %v890_v46, 0.0  ;;  %837 = vmatpush.msk.msra.mxu1 %vm72_vm2, %v890_v46  ;;  %v912_v46 = vmov 0.0  }
 0x359   :  { %v561_v49 = vrot.slane %v560_v48, 4  ;;  %838 = vmatmul.msk.f32.vlgmr.msra.gmra.mxu1 %vm68_vm3, %v966_v25 }
 0x35b   :  { %v562_v50 = vadd.f32 %v561_v49, %v560_v48 }
 0x35d   :  { %v563_v51 = vrot.slane %v562_v50, 2 }
 0x35f   :  { %v564_v52 = vadd.f32 %v563_v51, %v562_v50  ;;  %v675_v50 = vperm.slane %v674_v45, 0 }
 0x361   :  { %v565_v54 = vrot.slane %v564_v52, 1  ;;  %vm676_vm4 = vcmp.eq.s32.totalorder %v675_v50, 1 }
 0x363   :  { %v566_v55 = vadd.f32 %v565_v54, %v564_v52  ;;  %v857_v52 = vld [vmem:[%s1235_s1 + $0x2] ss:$0 sm:$0xff]  ;;  %v858_v54 = vld [vmem:[%s1235_s1 + $0x3] ss:$0 sm:$0xff] }
 0x365   :  { %891 = vlog2.f32 %v566_v55 }
 0x36b   :  { %v892_v56 = vpop.eup %891 }
 0x36c   :  { %v568_v57 = vmul.f32 0.6931472, %v892_v56 }
 0x36e   :  { %v569_v58 = vadd.f32 %v568_v57, %v528_v41  ;;  %v1079_v41 = vshrl.u32 %v33_v40, 7 }
 0x370   :  { %vm39_vm15 = vcmp.eq.s32.totalorder %v1079_v41, %v855_v42  ;;  %vm57_vm0 = vcmp.eq.s32.totalorder %v1079_v41, %v856_v43  ;;  %vm168_vm5 = vcmp.eq.s32.totalorder %v1079_v41, %v857_v52  ;;  %vm271_vm6 = vcmp.eq.s32.totalorder %v1079_v41, %v858_v54 }
 0x371   :  { %v808_v48 = vsel %vm39_vm15, 1.0, %v912_v46  ;;  %v1092_v49 = vsel %vm57_vm0, 1.0, %v912_v46  ;;  %v1110_v57 = vsel %vm168_vm5, 1.0, %v912_v46  ;;  %vm477_vm8 = vcmp.eq.s32.totalorder %v1079_v41, %v860_v63 }
 0x372   :  { %811 = vmatpush.msk.msra.mxu0 %vm72_vm2, %v808_v48  ;;  %817 = vmatpush.msk.msra.mxu2 %vm72_vm2, %v1092_v49 }
 0x373   :  { %812 = vmatmul.msk.f32.vlgmr.msra.gmra.mxu0 %vm68_vm3, %v941_v0  ;;  %818 = vmatmul.msk.f32.vlgmr.msra.gmra.mxu2 %vm68_vm3, %v941_v0 }
 0x374   :  { %823 = vmatpush.msk.msrb.mxu0 %vm72_vm2, %v1110_v57 }
 0x37b   :  { %824 = vmatmul.msk.f32.vlgmr.msrb.gmra.mxu0 %vm68_vm3, %v941_v0 }
 0x3d6   :  { %v552_v60 = vpop.f32.mrf.mxu1 }
 0x3d7   :  { %893 = vlog2.f32 %v552_v60  ;;  %v1118_v60 = vsel %vm271_vm6, 1.0, %v912_v46 }
 0x3d8   :  { %829 = vmatpush.msk.msrb.mxu2 %vm72_vm2, %v1118_v60  ;;  %v274_v40 = vmul.f32 %v1118_v60, %v1008_v26 }
 0x3d9   :  { %830 = vmatmul.msk.f32.vlgmr.msrb.gmra.mxu2 %vm68_vm3, %v941_v0 }
 0x3dd   :  { %v894_v1 = vpop.eup %893 }
 0x3de   :  { %v558_v2 = vmul.f32 0.6931472, %v894_v1 }
 0x3e0   :  { %v559_v3 = vadd.f32 %v558_v2, %v556_v44 }
 0x3e2   :  { %v574_v4 = vsel %vm573_vm13, %v559_v3, %v569_v58  ;;  %v859_v58 = vld [vmem:[%s1235_s1 + $0x4] ss:$0 sm:$0xff] }
 0x3e3   :  { %v625_v5 = vsel %vm43_vm1, %v574_v4, -inf  ;;  %vm374_vm7 = vcmp.eq.s32.totalorder %v1079_v41, %v859_v58 }
 0x3e4   :  { %v626_v6 = vrot.slane %v625_v5, 4  ;;  %v1132_v3 = vsel %vm374_vm7, 1.0, %v912_v46 }
 0x3e5   :  { %835 = vmatpush.msk.msra.mxu0 %vm72_vm2, %v1132_v3 }
 0x3e6   :  { %v627_v7 = vmax.f32 %v625_v5, %v626_v6  ;;  %v861_v5 = vld [vmem:[%s1235_s1 + $0x6] ss:$0 sm:$0xff]  ;;  %v1141_v6 = vsel %vm477_vm8, 1.0, %v912_v46  ;;  %836 = vmatmul.msk.f32.vlgmr.msra.gmra.mxu0 %vm68_vm3, %v941_v0 }
 0x3e7   :  { %841 = vmatpush.msk.msra.mxu2 %vm72_vm2, %v1141_v6  ;;  %vm580_vm9 = vcmp.eq.s32.totalorder %v1079_v41, %v861_v5  ;;  %v480_v26 = vmul.f32 %v1141_v6, %v1046_v39 }
 0x3e8   :  { %v628_v10 = vrot.slane %v627_v7, 2  ;;  %842 = vmatmul.msk.f32.vlgmr.msra.gmra.mxu2 %vm68_vm3, %v941_v0 }
 0x3e9   :  { %v481_v5 = vsel %vm43_vm1, %v480_v26, 0.0 }
 0x3ea   :  { %v629_v11 = vmax.f32 %v627_v7, %v628_v10  ;;  %v482_v39 = vrot.slane %v481_v5, 4 }
 0x3ec   :  { %v630_v13 = vrot.slane %v629_v11, 1 }
 0x3ee   :  { %v631_v14 = vmax.f32 %v629_v11, %v630_v13  ;;  %v1151_v13 = vsel %vm580_vm9, 1.0, %v912_v46 }
 0x3ef   :  { %847 = vmatpush.msk.msrb.mxu0 %vm72_vm2, %v1151_v13 }
 0x3f0   :  { %v632_v16 = vsub.f32 %v574_v4, %v631_v14  ;;  %v659_v17 = vadd.f32 %v658_v15, %v631_v14  ;;  %848 = vmatmul.msk.f32.vlgmr.msrb.gmra.mxu0 %vm68_vm3, %v941_v0  ;;  %v42_v0 = vmul.f32 %v808_v48, %v947_v9  ;;  %v275_v9 = vsel %vm43_vm1, %v274_v40, 0.0 }
 0x3f2   :  { %v633_v19 = vmul.f32 1.442695, %v632_v16 }
 0x3f4   :  { %895 = vpow2.f32 %v633_v19 }
 0x3fa   :  { %v896_v22 = vpop.eup %895 }
 0x3fb   :  { %v663_v24 = vsel %vm43_vm1, %v896_v22, 0.0  ;;  %843 = vmatpush.msk.msra.mxu3 %vm72_vm2, %v896_v22 }
 0x3fc   :  { %v664_v27 = vrot.slane %v663_v24, 4  ;;  %844 = vmatmul.msk.f32.vlgmr.msra.gmra.mxu3 %vm68_vm3, %v966_v25 }
 0x3fe   :  { %v665_v28 = vadd.f32 %v664_v27, %v663_v24 }
 0x400   :  { %v666_v29 = vrot.slane %v665_v28, 2 }
 0x402   :  { %v667_v30 = vadd.f32 %v666_v29, %v665_v28 }
 0x404   :  { %v668_v31 = vrot.slane %v667_v30, 1 }
 0x406   :  { %v669_v32 = vadd.f32 %v668_v31, %v667_v30 }
 0x408   :  { %897 = vlog2.f32 %v669_v32 }
 0x40e   :  { %v898_v21 = vpop.eup %897 }
 0x40f   :  { %v671_v34 = vmul.f32 0.6931472, %v898_v21 }
 0x411   :  { %v672_v35 = vadd.f32 %v671_v34, %v631_v14  ;;  %v60_v34 = vmul.f32 %v1092_v49, %v980_v36  ;;  %v276_v36 = vrot.slane %v275_v9, 4 }
 0x413   :  { %v61_v42 = vsel %vm43_vm1, %v60_v34, 0.0  ;;  %v277_v58 = vadd.f32 %v276_v36, %v275_v9 }
 0x414   :  { %v62_v45 = vrot.slane %v61_v42, 4 }
 0x416   :  { %v63_v52 = vadd.f32 %v62_v45, %v61_v42 }
 0x47f   :  { %v655_v44 = vpop.f32.mrf.mxu3 }
 0x480   :  { %899 = vlog2.f32 %v655_v44 }
 0x486   :  { %v900_v51 = vpop.eup %899 }
 0x487   :  { %v661_v55 = vmul.f32 0.6931472, %v900_v51  ;;  %v93_v51 = vpop.f32.mrf.mxu0 }
 0x489   :  { %v662_v56 = vadd.f32 %v661_v55, %v659_v17 }
 0x48b   :  { %v677_v62 = vsel %vm676_vm4, %v662_v56, %v672_v35  ;;  %v171_v35 = vmul.f32 %v1110_v57, %v989_v53  ;;  %v377_v53 = vmul.f32 %v1132_v3, %v1027_v61  ;;  %v583_v56 = vmul.f32 %v1151_v13, %v1065_v12 }
 0x48c   :  { %v728_v1 = vsel %vm43_vm1, %v677_v62, -inf  ;;  %v278_v61 = vrot.slane %v277_v58, 2 }
 0x48d   :  { %v729_v2 = vrot.slane %v728_v1, 4  ;;  %v172_v43 = vsel %vm43_vm1, %v171_v35, 0.0 }
 0x48e   :  { %v173_v50 = vrot.slane %v172_v43, 4  ;;  %v279_v12 = vadd.f32 %v278_v61, %v277_v58 }
 0x48f   :  { %v730_v4 = vmax.f32 %v728_v1, %v729_v2  ;;  %v378_v1 = vsel %vm43_vm1, %v377_v53, 0.0  ;;  %v199_v2 = vpop.f32.mrf.mxu2 }
 0x490   :  { %v174_v54 = vadd.f32 %v173_v50, %v172_v43  ;;  %v280_v40 = vrot.slane %v279_v12, 1 }
 0x491   :  { %v731_v7 = vrot.slane %v730_v4, 2 }
 0x492   :  { %v175_v63 = vrot.slane %v174_v54, 2  ;;  %v281_v26 = vadd.f32 %v280_v40, %v279_v12 }
 0x493   :  { %v732_v10 = vmax.f32 %v730_v4, %v731_v7  ;;  %v584_v7 = vsel %vm43_vm1, %v583_v56, 0.0 }
 0x495   :  { %v733_v11 = vrot.slane %v732_v10, 1 }
 0x497   :  { %v734_v14 = vmax.f32 %v732_v10, %v733_v11  ;;  %v302_v10 = vpop.f32.mrf.mxu0  ;;  %v379_v11 = vrot.slane %v378_v1, 4 }
 0x498   :  { %v305_v43 = vmul.f32 %v1118_v60, %v302_v10 }
 0x499   :  { %v735_v15 = vsub.f32 %v677_v62, %v734_v14  ;;  %v1156_v16 = vadd.f32 %v964_v23, %v734_v14  ;;  %v64_v62 = vrot.slane %v63_v52, 2 }
 0x49b   :  { %v736_v17 = vmul.f32 1.442695, %v735_v15  ;;  %v176_v15 = vadd.f32 %v175_v63, %v174_v54  ;;  %v1204_v63 = vld [vmem:[%s1234_s2 + $0x7] sm:$0x1] }
 0x49d   :  { %901 = vpow2.f32 %v736_v17  ;;  %v585_v17 = vrot.slane %v584_v7, 4 }
 0x49f   :  { %v508_v35 = vpop.f32.mrf.mxu0 }
 0x4a0   :  { %v511_v60 = vmul.f32 %v1141_v6, %v508_v35 }
 0x4a2   :  { %v512_v10 = vsel %vm43_vm1, %v511_v60, 0.0 }
 0x4a3   :  { %v902_v19 = vpop.eup %901 }
 0x4a4   :  { %v766_v22 = vsel %vm43_vm1, %v902_v19, 0.0  ;;  %849 = vmatpush.msk.msrb.mxu1 %vm72_vm2, %v902_v19 }
 0x4a5   :  { %v767_v24 = vrot.slane %v766_v22, 4  ;;  %850 = vmatmul.msk.f32.vlgmr.msrb.gmra.mxu1 %vm68_vm3, %v966_v25  ;;  %v44_v25 = vsel %vm43_vm1, %v42_v0, 0.0  ;;  %vm776_vm3 = vcmp.gt.f32.partialorder %v1204_v63, 0.0 }
 0x4a6   :  { %v45_v44 = vrot.slane %v44_v25, 4 }
 0x4a7   :  { %v768_v27 = vadd.f32 %v767_v24, %v766_v22  ;;  %v380_v22 = vadd.f32 %v379_v11, %v378_v1  ;;  %v96_v24 = vmul.f32 %v1092_v49, %v93_v51  ;;  %v306_v51 = vsel %vm43_vm1, %v305_v43, 0.0 }
 0x4a8   :  { %v46_v48 = vadd.f32 %v45_v44, %v44_v25  ;;  %v37_v25 = vld [vmem:[%s1234_s2] sm:$0x1] }
 0x4a9   :  { %v769_v28 = vrot.slane %v768_v27, 2  ;;  %v381_v42 = vrot.slane %v380_v22, 2 }
 0x4aa   :  { %v47_v55 = vrot.slane %v46_v48, 2 }
 0x4ab   :  { %v770_v29 = vadd.f32 %v769_v28, %v768_v27  ;;  %v177_v28 = vrot.slane %v176_v15, 1  ;;  %v382_v56 = vadd.f32 %v381_v42, %v380_v22 }
 0x4ac   :  { %v48_v4 = vadd.f32 %v47_v55, %v46_v48  ;;  %v307_v55 = vrot.slane %v306_v51, 4 }
 0x4ad   :  { %v771_v30 = vrot.slane %v770_v29, 1  ;;  %v178_v45 = vadd.f32 %v177_v28, %v176_v15  ;;  %v383_v43 = vrot.slane %v382_v56, 1 }
 0x4ae   :  { %v49_v19 = vrot.slane %v48_v4, 1 }
 0x4af   :  { %v772_v23 = vadd.f32 %v771_v30, %v770_v29  ;;  %v483_v29 = vadd.f32 %v482_v39, %v481_v5  ;;  %v586_v30 = vadd.f32 %v585_v17, %v584_v7  ;;  %v714_v39 = vpop.f32.mrf.mxu0  ;;  %v513_v17 = vrot.slane %v512_v10, 4 }
 0x4b0   :  { %v50_v0 = vadd.f32 %v49_v19, %v48_v4 }
 0x4b1   :  { %903 = vlog2.f32 %v772_v23  ;;  %v97_v23 = vsel %vm43_vm1, %v96_v24, 0.0  ;;  %v484_v48 = vrot.slane %v483_v29, 2 }
 0x4b2   :  { %v98_v34 = vrot.slane %v97_v23, 4 }
 0x4b3   :  { %v485_v5 = vadd.f32 %v484_v48, %v483_v29  ;;  %v514_v29 = vadd.f32 %v513_v17, %v512_v10 }
 0x4b4   :  { %v99_v50 = vadd.f32 %v98_v34, %v97_v23 }
 0x4b5   :  { %v515_v35 = vrot.slane %v514_v29, 2 }
 0x4b6   :  { %v100_v54 = vrot.slane %v99_v50, 2 }
 0x4b7   :  { %v904_v31 = vpop.eup %903 }
 0x4b8   :  { %v774_v32 = vmul.f32 0.6931472, %v904_v31  ;;  %v202_v31 = vmul.f32 %v1110_v57, %v199_v2  ;;  %v587_v57 = vrot.slane %v586_v30, 2  ;;  %v308_v2 = vadd.f32 %v307_v55, %v306_v51 }
 0x4ba   :  { %v1164_v21 = vadd.f32 %v774_v32, %v734_v14  ;;  %v65_v14 = vadd.f32 %v64_v62, %v63_v52  ;;  %v405_v32 = vpop.f32.mrf.mxu2  ;;  %v203_v49 = vsel %vm43_vm1, %v202_v31, 0.0  ;;  %v51_v52 = vmul.f32 %v50_v0, %v37_v25  ;;  %v862_v62 = vld [vmem:[%s1235_s1 + $0x7] ss:$0 sm:$0xff] }
 0x4bb   :  { %v204_v9 = vrot.slane %v203_v49, 4  ;;  %v408_v36 = vmul.f32 %v1132_v3, %v405_v32  ;;  %v101_v3 = vadd.f32 %v100_v54, %v99_v50  ;;  %v588_v7 = vadd.f32 %v587_v57, %v586_v30 }
 0x4bc   :  { %v66_v27 = vrot.slane %v65_v14, 1  ;;  %vm683_vm2 = vcmp.eq.s32.totalorder %v1079_v41, %v862_v62 }
 0x4bd   :  { %v205_v53 = vadd.f32 %v204_v9, %v203_v49  ;;  %v409_v58 = vsel %vm43_vm1, %v408_v36, 0.0  ;;  %v102_v6 = vrot.slane %v101_v3, 1  ;;  %v846_v12 = vsel %vm683_vm2, 1.0, %v912_v46 }
 0x4be   :  { %v67_v44 = vadd.f32 %v66_v27, %v65_v14  ;;  %v410_v4 = vrot.slane %v409_v58, 4  ;;  %v309_v14 = vrot.slane %v308_v2, 2  ;;  %v686_v41 = vmul.f32 %v846_v12, %v956_v20 }
 0x4bf   :  { %v206_v1 = vrot.slane %v205_v53, 2  ;;  %v103_v22 = vadd.f32 %v102_v6, %v101_v3  ;;  %v717_v23 = vmul.f32 %v846_v12, %v714_v39  ;;  %v516_v9 = vadd.f32 %v515_v35, %v514_v29 }
 0x4c0   :  { %v411_v15 = vadd.f32 %v410_v4, %v409_v58  ;;  %v310_v27 = vadd.f32 %v309_v14, %v308_v2  ;;  %v384_v36 = vadd.f32 %v383_v43, %v382_v56 }
 0x4c1   :  { %v207_v11 = vadd.f32 %v206_v1, %v205_v53  ;;  %v104_v31 = vadd.f32 %v103_v22, %v67_v44  ;;  %v718_v46 = vsel %vm43_vm1, %v717_v23, 0.0  ;;  %v486_v53 = vrot.slane %v485_v5, 1 }
 0x4c2   :  { %v611_v61 = vpop.f32.mrf.mxu2  ;;  %v412_v28 = vrot.slane %v411_v15, 2  ;;  %v311_v0 = vrot.slane %v310_v27, 1  ;;  %v517_v55 = vrot.slane %v516_v9, 1  ;;  %v719_v6 = vrot.slane %v718_v46, 4 }
 0x4c3   :  { %v614_v19 = vmul.f32 %v1151_v13, %v611_v61  ;;  %v208_v24 = vrot.slane %v207_v11, 1  ;;  %v687_v13 = vsel %vm43_vm1, %v686_v41, 0.0  ;;  %v105_v40 = vmul.f32 %v104_v31, %v974_v33 }
 0x4c4   :  { %v413_v34 = vadd.f32 %v412_v28, %v411_v15  ;;  %v312_v49 = vadd.f32 %v311_v0, %v310_v27  ;;  %v688_v20 = vrot.slane %v687_v13, 4  ;;  %v487_v2 = vadd.f32 %v486_v53, %v485_v5 }
 0x4c5   :  { %v615_v30 = vsel %vm43_vm1, %v614_v19, 0.0  ;;  %v209_v32 = vadd.f32 %v208_v24, %v207_v11  ;;  %v106_v57 = vadd.f32 %v105_v40, %v51_v52  ;;  %v518_v4 = vadd.f32 %v517_v55, %v516_v9 }
 0x4c6   :  { %v616_v25 = vrot.slane %v615_v30, 4  ;;  %v414_v50 = vrot.slane %v413_v34, 1  ;;  %v313_v51 = vadd.f32 %v312_v49, %v281_v26  ;;  %v689_v3 = vadd.f32 %v688_v20, %v687_v13 }
 0x4c7   :  { %v210_v42 = vadd.f32 %v209_v32, %v178_v45  ;;  %v589_v45 = vrot.slane %v588_v7, 1  ;;  %v519_v61 = vadd.f32 %v518_v4, %v487_v2  ;;  %v720_v39 = vadd.f32 %v719_v6, %v718_v46 }
 0x4c8   :  { %v617_v48 = vadd.f32 %v616_v25, %v615_v30  ;;  %v415_v54 = vadd.f32 %v414_v50, %v413_v34  ;;  %v314_v33 = vmul.f32 %v313_v51, %v1019_v47  ;;  %v690_v26 = vrot.slane %v689_v3, 2 }
 0x4c9   :  { %v211_v44 = vmul.f32 %v210_v42, %v1000_v8  ;;  %v777_v8 = vsel %vm776_vm3, 1, %v911_v37  ;;  %v590_v11 = vadd.f32 %v589_v45, %v588_v7  ;;  %v520_v12 = vmul.f32 %v519_v61, %v1057_v59 }
 0x4ca   :  { %v618_v58 = vrot.slane %v617_v48, 2  ;;  %v416_v1 = vadd.f32 %v415_v54, %v384_v36  ;;  %v691_v47 = vadd.f32 %v690_v26, %v689_v3  ;;  %v778_v15 = vperm.slane %v777_v8, 0 }
 0x4cb   :  { %v212_v62 = vadd.f32 %v211_v44, %v106_v57  ;;  %v721_v24 = vrot.slane %v720_v39, 2 }
 0x4cc   :  { %v619_v52 = vadd.f32 %v618_v58, %v617_v48  ;;  %v417_v10 = vmul.f32 %v416_v1, %v1038_v18  ;;  %v692_v22 = vrot.slane %v691_v47, 1  ;;  %vm779_vm10 = vcmp.eq.s32.totalorder %v778_v15, 1 }
 0x4cd   :  { %v315_v56 = vadd.f32 %v314_v33, %v212_v62  ;;  %v722_v28 = vadd.f32 %v721_v24, %v720_v39 }
 0x4ce   :  { %v620_v14 = vrot.slane %v619_v52, 1  ;;  %v693_v30 = vadd.f32 %v692_v22, %v691_v47 }
 0x4cf   :  { %v418_v5 = vadd.f32 %v417_v10, %v315_v56  ;;  %v723_v41 = vrot.slane %v722_v28, 1 }
 0x4d0   :  { %v621_v17 = vadd.f32 %v620_v14, %v619_v52 }
 0x4d1   :  { %v521_v29 = vadd.f32 %v520_v12, %v418_v5  ;;  %v724_v32 = vadd.f32 %v723_v41, %v722_v28 }
 0x4d2   :  { %v622_v27 = vadd.f32 %v621_v17, %v590_v11 }
 0x4d3   :  { %v725_v34 = vadd.f32 %v724_v32, %v693_v30 }
 0x4d4   :  { %v623_v7 = vmul.f32 %v622_v27, %v1076_v38 }
 0x4d5   :  { %v726_v25 = vmul.f32 %v725_v34, %v1204_v63 }
 0x4d6   :  { %v624_v59 = vadd.f32 %v623_v7, %v521_v29 }
 0x4d8   :  { %v727_v46 = vadd.f32 %v726_v25, %v624_v59 }
 0x522   :  { %v758_v60 = vpop.f32.mrf.mxu1 }
 0x523   :  { %905 = vlog2.f32 %v758_v60 }
 0x529   :  { %v906_v19 = vpop.eup %905 }
 0x52a   :  { %v764_v37 = vmul.f32 0.6931472, %v906_v19 }
 0x52c   :  { %v765_v18 = vadd.f32 %v764_v37, %v1156_v16 }
 0x52e   :  { %v780_v23 = vsel %vm779_vm10, %v765_v18, %v1164_v21 }
 0x52f   :  { %v781_v31 = vsel %vm43_vm1, %v780_v23, -inf }
 0x530   :  { %v782_v0 = vrot.slane %v781_v31, 4 }
 0x532   :  { %v783_v35 = vmax.f32 %v781_v31, %v782_v0 }
 0x534   :  { %v784_v13 = vrot.slane %v783_v35, 2 }
 0x536   :  { %v785_v40 = vmax.f32 %v783_v35, %v784_v13 }
 0x538   :  { %v786_v16 = vrot.slane %v785_v40, 1 }
 0x53a   :  { %v787_v42 = vmax.f32 %v785_v40, %v786_v16 }
 0x53c   :  { %v788_v49 = vsub.f32 %v780_v23, %v787_v42 }
 0x53e   :  { %v789_v38 = vmul.f32 1.442695, %v788_v49 }
 0x540   :  { %907 = vpow2.f32 %v789_v38 }
 0x546   :  { %v908_v43 = vpop.eup %907 }
 0x547   :  { %v791_v21 = vsel %vm43_vm1, %v908_v43, 0.0 }
 0x548   :  { %v792_v50 = vrot.slane %v791_v21, 4 }
 0x54a   :  { %v793_v9 = vadd.f32 %v792_v50, %v791_v21 }
 0x54c   :  { %v794_v48 = vrot.slane %v793_v9, 2 }
 0x54e   :  { %v795_v20 = vadd.f32 %v794_v48, %v793_v9 }
 0x550   :  { %v796_v57 = vrot.slane %v795_v20, 1 }
 0x552   :  { %v797_v44 = vadd.f32 %v796_v57, %v795_v20 }
 0x554   :  { %909 = vlog2.f32 %v797_v44 }
 0x55a   :  { %v910_v51 = vpop.eup %909 }
 0x55b   :  { %v799_v63 = vmul.f32 0.6931472, %v910_v51 }
 0x55d   :  { %v800_v36 = vadd.f32 %v799_v63, %v787_v42 }
 0x55f   :  { %v801_v54 = vsub.f32 %v800_v36, %v727_v46 }
 0x561   :  { %803 = vst.msk [vmem:[%s1236_s4] sm:$0x1] %vm802_vm11, %v801_v54 }

</bundles_post_ra>
